<compile_context>
chip_gen: v5e
topology: v5e:2x2
jax: 0.10.0
libtpu: 0.0.40
codegen_flags: <defaults>
</compile_context>

<pallas_src>
import functools

import jax
import jax.numpy as jnp
from jax.experimental import pallas as pl
from jax.experimental.pallas import tpu as pltpu


def _ffn_kernel(x_ref, w1_ref, b1_ref, w2_ref, b2_ref, o_ref, acc_ref, *, mxu_dtype):
    # x_ref  : (tm, D)   row tile of the flattened input (k-invariant)
    # w1_ref : (D, th)   chunk of W1 columns
    # b1_ref : (1, th)   chunk of b1 (f32)
    # w2_ref : (th, D)   chunk of W2 rows
    # b2_ref : (1, D)    full b2 (f32, added once at the last hidden chunk)
    # o_ref  : (tm, D)   output tile (written once, at the last hidden chunk)
    # acc_ref: (tm, D)   f32 accumulator, resident across the hidden-chunk axis
    k = pl.program_id(1)

    @pl.when(k == 0)
    def _init():
        acc_ref[...] = jnp.zeros_like(acc_ref)

    # First matmul on the MXU (bf16 operands by default, f32 accumulation);
    # bias + ReLU on the VPU in f32.
    x_t = x_ref[...]
    w1_t = w1_ref[...]
    if mxu_dtype is not None:
        x_t = x_t.astype(mxu_dtype)
        w1_t = w1_t.astype(mxu_dtype)
    h = jnp.dot(x_t, w1_t, preferred_element_type=jnp.float32)
    h = jnp.maximum(h + b1_ref[...].astype(jnp.float32), 0.0)

    # Second matmul: cast h down to the MXU dtype, accumulate in f32 scratch.
    w2_t = w2_ref[...]
    if mxu_dtype is not None:
        h = h.astype(mxu_dtype)
        w2_t = w2_t.astype(mxu_dtype)
    else:
        h = h.astype(w2_t.dtype)
    acc_ref[...] += jnp.dot(h, w2_t, preferred_element_type=jnp.float32)

    @pl.when(k == pl.num_programs(1) - 1)
    def _finalize():
        # b2 is added exactly once, after the full hidden reduction.
        o_ref[...] = (acc_ref[...] + b2_ref[...].astype(jnp.float32)).astype(o_ref.dtype)
        # TODO(synk): training-mode dropout (p=0.1) would need
        # pltpu.prng_seed(seed + program_id) + pltpu.stateful_bernoulli and
        # 1/(1-p) scaling here; eval-mode dropout is the identity.


def _round_up(x, n):
    return (x + n - 1) // n * n


def _largest_aligned_divisor(total, target, align):
    """Largest divisor of `total` that is a multiple of `align` and <= `target`.

    Returns `total` itself if it already fits in `target`; None if no aligned
    divisor exists.
    """
    if total <= target:
        return total
    best = None
    c = align
    while c <= target:
        if total % c == 0:
            best = c
        c += align
    return best


def _vmem_capacity_bytes():
    """Physical VMEM per TensorCore; conservative (v7x-sized) fallback."""
    try:
        return int(pltpu.get_tpu_info().vmem_capacity_bytes)
    except Exception:
        return 64 * 1024 * 1024


@functools.partial(jax.jit, static_argnames=("tm", "th", "mxu_dtype"))
def feed_forward(x, w1, b1, w2, b2, *, tm=None, th=None, mxu_dtype=jnp.bfloat16):
    """x: (batch, seq, D) -> (batch, seq, D), matching FeedForward.forward (eval).

    `mxu_dtype` is the matmul operand dtype (bf16 default -> native MXU rate,
    f32 accumulation inside the kernel); pass None to keep matmuls in the
    input/weight dtype (exact f32 path).
    """
    out_dtype = x.dtype
    batch, seq, d = x.shape
    d_in, hidden = w1.shape
    assert d_in == d and w2.shape == (hidden, d)
    assert b1.shape == (hidden,) and b2.shape == (d,)

    vmem_cap = _vmem_capacity_bytes()
    big_vmem = vmem_cap >= 100 * 1024 * 1024   # v5e/v6e (128 MiB) vs v7x (64 MiB)

    in_is_16bit = jnp.dtype(x.dtype).itemsize == 2
    sublane = 16 if in_is_16bit else 8

    # Generation-aware tile defaults: bigger row tiles on 128-MiB parts keep the
    # kernel on the MXU roofline (weights are re-streamed once per row tile);
    # smaller tiles on v7x stay inside 64 MiB with double-buffering.
    if tm is None:
        tm = (1024 if in_is_16bit else 512) if big_vmem else (512 if in_is_16bit else 256)
    if th is None:
        th = 1024 if big_vmem else (512 if in_is_16bit else 256)

    # Row tiling over the flattened (batch*seq) axis.
    m = batch * seq
    tm_eff = min(tm, _round_up(m, sublane))
    # v7x has 2 TensorCores per chip; make sure the "parallel" row axis has at
    # least 2 programs when there are enough rows to split.
    if (not big_vmem) and _round_up(m, tm_eff) // tm_eff == 1 and m >= 2 * sublane:
        tm_eff = _round_up((m + 1) // 2, sublane)
    m_pad = _round_up(m, tm_eff)

    # Hidden-dim chunking: largest divisor of H that is 256-aligned (MXU tile on
    # v6e/v7x, also 128-aligned so fine on v5e), else 128-aligned, else full H
    # (last resort, only sensible for small H).
    th_eff = (_largest_aligned_divisor(hidden, th, 256)
              or _largest_aligned_divisor(hidden, th, 128)
              or hidden)

    x2d = x.reshape(m, d)
    if m_pad != m:   # tail padding only when unavoidable (costs one HBM pass)
        x2d = jnp.pad(x2d, ((0, m_pad - m), (0, 0)))
    # Biases stay in f32: they are added to the f32 accumulator in-kernel.
    b1_2d = b1.astype(jnp.float32).reshape(1, hidden)
    b2_2d = b2.astype(jnp.float32).reshape(1, d)

    grid = (m_pad // tm_eff, hidden // th_eff)
    n_row_tiles = grid[0]

    x_bytes = jnp.dtype(x.dtype).itemsize
    w_bytes = jnp.dtype(w1.dtype).itemsize
    cost = pl.CostEstimate(
        flops=4 * m_pad * d * hidden,
        transcendentals=0,
        bytes_accessed=(m_pad * d * x_bytes                            # x
                        + n_row_tiles * 2 * d * hidden * w_bytes       # W1+W2 per row tile
                        + n_row_tiles * (hidden + d) * 4               # biases (f32)
                        + m_pad * d * jnp.dtype(out_dtype).itemsize),  # out
    )

    kernel = functools.partial(_ffn_kernel, mxu_dtype=mxu_dtype)

    out2d = pl.pallas_call(
        kernel,
        out_shape=jax.ShapeDtypeStruct((m_pad, d), out_dtype),
        grid_spec=pltpu.PrefetchScalarGridSpec(
            num_scalar_prefetch=0,
            grid=grid,
            in_specs=[
                pl.BlockSpec((tm_eff, d), lambda i, k: (i, 0)),    # x rows (k-invariant)
                pl.BlockSpec((d, th_eff), lambda i, k: (0, k)),    # W1 column chunk
                pl.BlockSpec((1, th_eff), lambda i, k: (0, k)),    # b1 chunk
                pl.BlockSpec((th_eff, d), lambda i, k: (k, 0)),    # W2 row chunk
                pl.BlockSpec((1, d), lambda i, k: (0, 0)),         # b2 (full)
            ],
            out_specs=pl.BlockSpec((tm_eff, d), lambda i, k: (i, 0)),
            scratch_shapes=[pltpu.VMEM((tm_eff, d), jnp.float32)],
        ),
        compiler_params=pltpu.CompilerParams(
            # Row axis shards across TensorCores (2 on v7x); the hidden-chunk
            # reduction axis must stay "arbitrary" and last.
            dimension_semantics=("parallel", "arbitrary"),
            vmem_limit_bytes=(100 if big_vmem else 48) * 1024 * 1024,
        ),
        cost_estimate=cost,
    )(x2d, w1, b1_2d, w2, b2_2d)

    return out2d[:m].reshape(batch, seq, d)


def init_params(key, input_dim, hidden_dim, dtype=jnp.float32):
    """Deterministic init matching torch.nn.Linear's default (Kaiming-uniform-ish)."""
    k1, k2, k3, k4 = jax.random.split(key, 4)
    bound1 = 1.0 / jnp.sqrt(input_dim)
    bound2 = 1.0 / jnp.sqrt(hidden_dim)
    w1 = jax.random.uniform(k1, (input_dim, hidden_dim), dtype, -bound1, bound1)
    b1 = jax.random.uniform(k2, (hidden_dim,), dtype, -bound1, bound1)
    w2 = jax.random.uniform(k3, (hidden_dim, input_dim), dtype, -bound2, bound2)
    b2 = jax.random.uniform(k4, (input_dim,), dtype, -bound2, bound2)
    return w1, b1, w2, b2


if __name__ == "__main__":
    # Small shapes consistent with the module (defaults D=512, H=2048, scaled
    # down); th=256 makes the hidden-chunk reduction axis actually iterate.
    batch, seq, input_dim, hidden_dim = 2, 8, 256, 512

    key = jax.random.PRNGKey(0)
    kx, kp = jax.random.split(key)
    x = jax.random.normal(kx, (batch, seq, input_dim), jnp.float32)
    w1, b1, w2, b2 = init_params(kp, input_dim, hidden_dim)

    # Reference in plain JAX (dropout = identity in eval mode).
    ref = jnp.maximum(x.reshape(-1, input_dim) @ w1 + b1, 0.0) @ w2 + b2
    ref = ref.reshape(batch, seq, input_dim)

    # Default path: bf16 MXU operands, f32 accumulation, 2 hidden chunks.
    out = jax.block_until_ready(feed_forward(x, w1, b1, w2, b2, th=256))
    assert out.shape == (batch, seq, input_dim)
    assert jnp.allclose(out, ref, atol=5e-2, rtol=5e-2)

    # Auto-tiled default config (single hidden chunk at this small H).
    out_auto = jax.block_until_ready(feed_forward(x, w1, b1, w2, b2))
    assert jnp.allclose(out_auto, ref, atol=5e-2, rtol=5e-2)

    # Exact f32 MXU path, tight tolerance.
    out_f32 = jax.block_until_ready(
        feed_forward(x, w1, b1, w2, b2, th=256, mxu_dtype=None))
    assert jnp.allclose(out_f32, ref, atol=1e-3, rtol=1e-3)

    print("KERNEL_OK")
</pallas_src>

<mosaic_0001>
module attributes {stable_mosaic.version = 11 : i64} {
  func.func @_ffn_kernel(%arg0: i32, %arg1: i32, %arg2: memref<8x256xf32, #tpu.memory_space<vmem>>, %arg3: memref<256x256xf32, #tpu.memory_space<vmem>>, %arg4: memref<1x256xf32, #tpu.memory_space<vmem>>, %arg5: memref<256x256xf32, #tpu.memory_space<vmem>>, %arg6: memref<1x256xf32, #tpu.memory_space<vmem>>, %arg7: memref<8x256xf32, #tpu.memory_space<vmem>>, %arg8: memref<8x256xf32, #tpu.memory_space<vmem>>) attributes {dimension_semantics = [#tpu.dimension_semantics<parallel>, #tpu.dimension_semantics<arbitrary>], iteration_bounds = array<i64: 2, 2>, scalar_prefetch = 0 : i64, scratch_operands = 1 : i64, tpu.core_type = #tpu.core_type<tc>, window_params = [{transform_indices = @transform_0, window_bounds = array<i64: 8, 256>}, {transform_indices = @transform_1, window_bounds = array<i64: 256, 256>}, {transform_indices = @transform_2, window_bounds = array<i64: 1, 256>}, {transform_indices = @transform_3, window_bounds = array<i64: 256, 256>}, {pipeline_mode = #tpu.pipeline_mode<synchronous>, transform_indices = @transform_4, window_bounds = array<i64: 1, 256>}, {transform_indices = @transform_5, window_bounds = array<i64: 8, 256>}]} {
    %c0_i32 = arith.constant 0 : i32
    %0 = arith.cmpi eq, %arg1, %c0_i32 : i32
    %1 = arith.extui %0 : i1 to i32
    %c0_i32_0 = arith.constant 0 : i32
    %2 = arith.cmpi ne, %1, %c0_i32_0 : i32
    scf.if %2 {
      %cst_15 = arith.constant 0.000000e+00 : f32
      %23 = vector.broadcast %cst_15 : f32 to vector<8x256xf32>
      %c0_16 = arith.constant 0 : index
      %c0_17 = arith.constant 0 : index
      %24 = vector.load %arg8[%c0_16, %c0_17] : memref<8x256xf32, #tpu.memory_space<vmem>>, vector<8x256xf32>
      tpu.vector_store %arg8[%c0_16, %c0_17], %23 {strides = array<i32>} : memref<8x256xf32, #tpu.memory_space<vmem>>, vector<8x256xf32>,
    } else {
    }
    %c0 = arith.constant 0 : index
    %c0_1 = arith.constant 0 : index
    %3 = vector.load %arg2[%c0, %c0_1] : memref<8x256xf32, #tpu.memory_space<vmem>>, vector<8x256xf32>
    %c0_2 = arith.constant 0 : index
    %c0_3 = arith.constant 0 : index
    %4 = vector.load %arg3[%c0_2, %c0_3] : memref<256x256xf32, #tpu.memory_space<vmem>>, vector<256x256xf32>
    %5 = arith.truncf %3 : vector<8x256xf32> to vector<8x256xbf16>
    %6 = arith.truncf %4 : vector<256x256xf32> to vector<256x256xbf16>
    %cst = arith.constant dense<0.000000e+00> : vector<8x256xf32>
    %7 = tpu.matmul %5, %6, %cst {dimension_numbers = #tpu.dot_dimension_numbers<[1], [0], [0], [1], [0, 0, 1, 1], [], []>} : vector<8x256xbf16>, vector<256x256xbf16>, vector<8x256xf32> -> vector<8x256xf32>
    %c0_4 = arith.constant 0 : index
    %c0_5 = arith.constant 0 : index
    %8 = vector.load %arg4[%c0_4, %c0_5] : memref<1x256xf32, #tpu.memory_space<vmem>>, vector<1x256xf32>
    %9 = vector.broadcast %8 : vector<1x256xf32> to vector<8x256xf32>
    %10 = arith.addf %7, %9 : vector<8x256xf32>
    %cst_6 = arith.constant 0.000000e+00 : f32
    %11 = vector.broadcast %cst_6 : f32 to vector<8x256xf32>
    %12 = arith.maximumf %10, %11 : vector<8x256xf32>
    %c0_7 = arith.constant 0 : index
    %c0_8 = arith.constant 0 : index
    %13 = vector.load %arg5[%c0_7, %c0_8] : memref<256x256xf32, #tpu.memory_space<vmem>>, vector<256x256xf32>
    %14 = arith.truncf %12 : vector<8x256xf32> to vector<8x256xbf16>
    %15 = arith.truncf %13 : vector<256x256xf32> to vector<256x256xbf16>
    %c0_9 = arith.constant 0 : index
    %c0_10 = arith.constant 0 : index
    %16 = vector.load %arg8[%c0_9, %c0_10] : memref<8x256xf32, #tpu.memory_space<vmem>>, vector<8x256xf32>
    %cst_11 = arith.constant dense<0.000000e+00> : vector<8x256xf32>
    %17 = tpu.matmul %14, %15, %cst_11 {dimension_numbers = #tpu.dot_dimension_numbers<[1], [0], [0], [1], [0, 0, 1, 1], [], []>} : vector<8x256xbf16>, vector<256x256xbf16>, vector<8x256xf32> -> vector<8x256xf32>
    %18 = arith.addf %16, %17 : vector<8x256xf32>
    %c0_12 = arith.constant 0 : index
    %c0_13 = arith.constant 0 : index
    %19 = vector.load %arg8[%c0_12, %c0_13] : memref<8x256xf32, #tpu.memory_space<vmem>>, vector<8x256xf32>
    tpu.vector_store %arg8[%c0_12, %c0_13], %18 {strides = array<i32>} : memref<8x256xf32, #tpu.memory_space<vmem>>, vector<8x256xf32>,
    %c1_i32 = arith.constant 1 : i32
    %20 = arith.cmpi eq, %arg1, %c1_i32 : i32
    %21 = arith.extui %20 : i1 to i32
    %c0_i32_14 = arith.constant 0 : i32
    %22 = arith.cmpi ne, %21, %c0_i32_14 : i32
    scf.if %22 {
      %c0_15 = arith.constant 0 : index
      %c0_16 = arith.constant 0 : index
      %23 = vector.load %arg8[%c0_15, %c0_16] : memref<8x256xf32, #tpu.memory_space<vmem>>, vector<8x256xf32>
      %c0_17 = arith.constant 0 : index
      %c0_18 = arith.constant 0 : index
      %24 = vector.load %arg6[%c0_17, %c0_18] : memref<1x256xf32, #tpu.memory_space<vmem>>, vector<1x256xf32>
      %25 = vector.broadcast %24 : vector<1x256xf32> to vector<8x256xf32>
      %26 = arith.addf %23, %25 : vector<8x256xf32>
      %c0_19 = arith.constant 0 : index
      %c0_20 = arith.constant 0 : index
      %27 = vector.load %arg7[%c0_19, %c0_20] : memref<8x256xf32, #tpu.memory_space<vmem>>, vector<8x256xf32>
      tpu.vector_store %arg7[%c0_19, %c0_20], %26 {strides = array<i32>} : memref<8x256xf32, #tpu.memory_space<vmem>>, vector<8x256xf32>,
    } else {
    }
    return
  }
  func.func @transform_0(%arg0: i32, %arg1: i32) -> (i32, i32) {
    %c0_i32 = arith.constant 0 : i32
    %c0_i32_0 = arith.constant 0 : i32
    return %arg0, %c0_i32 : i32, i32
  }
  func.func @transform_1(%arg0: i32, %arg1: i32) -> (i32, i32) {
    %c0_i32 = arith.constant 0 : i32
    %c0_i32_0 = arith.constant 0 : i32
    return %c0_i32, %arg1 : i32, i32
  }
  func.func @transform_2(%arg0: i32, %arg1: i32) -> (i32, i32) {
    %c0_i32 = arith.constant 0 : i32
    %c0_i32_0 = arith.constant 0 : i32
    return %c0_i32, %arg1 : i32, i32
  }
  func.func @transform_3(%arg0: i32, %arg1: i32) -> (i32, i32) {
    %c0_i32 = arith.constant 0 : i32
    %c0_i32_0 = arith.constant 0 : i32
    return %arg1, %c0_i32 : i32, i32
  }
  func.func @transform_4(%arg0: i32, %arg1: i32) -> (i32, i32) {
    %c0_i32 = arith.constant 0 : i32
    %c0_i32_0 = arith.constant 0 : i32
    %c0_i32_1 = arith.constant 0 : i32
    return %c0_i32, %c0_i32_0 : i32, i32
  }
  func.func @transform_5(%arg0: i32, %arg1: i32) -> (i32, i32) {
    %c0_i32 = arith.constant 0 : i32
    %c0_i32_0 = arith.constant 0 : i32
    return %arg0, %c0_i32 : i32, i32
  }
}

</mosaic_0001>

<bundles_post_ra>
// kernel: feed_forward.1
= control target key start
LH: loop header
LB: loop body
LE: loop exit
PB: predicated region body
PF: predicated region fallthrough
CT: control target
= control target key end

     0   :  { %s1649_s0 = inlined_call_operand.hbm [shape: f32[16,256], index: 0, kind: input, shape index: {}]   ;;  %s1650_s1 = inlined_call_operand.hbm [shape: f32[256,512], index: 1, kind: input, shape index: {}]   ;;  %s1651_s2 = inlined_call_operand.vmem [shape: f32[1,512], index: 2, kind: input, shape index: {}]   ;;  %s1652_s3 = inlined_call_operand.hbm [shape: f32[512,256], index: 3, kind: input, shape index: {}]   ;;  %s1653_s4 = inlined_call_operand.vmem [shape: f32[1,256], index: 4, kind: input, shape index: {}]   ;;  %s1654_s5 = inlined_call_operand.hbm [shape: f32[16,256], index: 5, kind: output, shape index: {}]  }
   0x1   :  { %1668 = sst [smem:[#allocation24_spill]] %s1650_s1 }
   0x2   :  { %1669 = sst [smem:[#allocation25_spill]] %s1653_s4 }
   0x3   :  { %1670 = sst [smem:[#allocation26_spill]] %s1654_s5 }
   0x4   :  { %10 = vsyncpa [#allocation4], 0 }
   0x5   :  { %12 = vsyncpa [#allocation4 + $0x1], 0 }
   0x6   :  { %13 = vsyncpa [#allocation7], 0 }
   0x7   :  { %15 = vsyncpa [#allocation7 + $0x1], 0 }
   0x8   :  { %16 = vsyncpa [#allocation5], 0 }
   0x9   :  { %18 = vsyncpa [#allocation5 + $0x1], 0  ;;  %s1246_s18 = smov 0   ;;  %s1248_s19 = smov 0  }
   0xa   :  { %s1250_s20 = smov 0   ;;  %s1252_s21 = smov 0  }
   0xb   :  { %s1254_s22 = smov 0   ;;  %s1256_s23 = smov 0  }
   0xc   :  { %s1258_s24 = smov 0   ;;  %s1260_s25 = smov 0  }
   0xd   :  { %s1262_s26 = smov 0   ;;  %s1264_s27 = smov 0  }
   0xe   :  { %s1266_s28 = smov 0  }
   0xf LB: > { %1671 = sst [smem:[#allocation13_spill]] %s1178_s20  ;;  %p51_p0 = scmp.eq.s32.totalorder %s1210_s28, 0  ;;  %s1210_s28 = sphi %s1266_s28, %s24_s28   ;;  %s1206_s27 = sphi %s1264_s27, %s1707_s27   ;;  %s1202_s26 = sphi %s1262_s26, %s1713_s26   ;;  %s1198_s25 = sphi %s1260_s25, %s1705_s25   ;;  %s1194_s24 = sphi %s1258_s24, %s1712_s24   ;;  %s1190_s23 = sphi %s1256_s23, %s1704_s23   ;;  %s1186_s22 = sphi %s1254_s22, %s1711_s22   ;;  %s1182_s21 = sphi %s1252_s21, %s1710_s21   ;;  %s1178_s20 = sphi %s1250_s20, %s1702_s20   ;;  %s1174_s19 = sphi %s1248_s19, %s1709_s19   ;;  %s1170_s18 = sphi %s1246_s18, %s1708_s18  }
  0x10   : > { %1672 = sst [smem:[#allocation14_spill]] %s1182_s21  ;;  %p76_p1 = scmp.ne.s32.totalorder %s1178_s20, %s1174_s19 }
  0x11   : > { %1673 = sst [smem:[#allocation15_spill]] %s1190_s23  ;;  %p1659_p2 = scmp.lt.s32.totalorder %s1210_s28, 4 }
  0x12   : > { %1674 = sst [smem:[#allocation16_spill]] %s1198_s25  ;;  %s228_s30 = sand.u32 1, %s1210_s28  }
  0x13   : > { %1675 = sst [smem:[#allocation17_spill]] %s1206_s27  ;;  %p78_p3 = por %p76_p1, %p51_p0 }
  0x14   : > { %s230_s6 = sand.u32 1, %s1178_s20   ;;  %s874_s7 = sshll.u32 %s1202_s26, 4 }
  0x15   : > { %s1311_s8 = sshll.u32 %s230_s6, 9  ;;  %s1676_s1 = sld [smem:[#allocation24_spill]] }
  0x16   : > { %s232_s13 = scalar_lea.vmem [#allocation6], %s1311_s8  ;;  %p1319_p4 = pnand %p1659_p2, %p78_p3 }
  0x17   : > { %s240_s14 = sshll.u32 %s232_s13, 4  ;;  %s1323_s16 = scalar_lea.sflag [#allocation7], %s228_s30  ;;  %s241_s14 = int_to_ptr.vmem [resolvable:$true] %s240_s14 }
  0x18   : > { %s1212_s17 = smov 512   ;;  %s1655_s6 = smov 256  }
  0x19   : > { %p860_p5 = scmp.ge.s32.totalorder %s1210_s28, 1  ;;  %p279_p6 = scmp.lt.s32.totalorder %s1210_s28, 5 }
  0x1a   : > { %s1337_s9 = sadd.s32 4294967295, %s1210_s28   ;;  %s847_s10 = sadd.s32 4294967294, %s1210_s28  }
  0x1b   : > { %s237_s11 = scalar_lea.hbm %s1676_s1, %s874_s7  ;;  %s1656_s7 = smov 16  }
  0x1c   : > { %s238_s12 = sshll.u32 %s237_s11, 4  ;;  %p1332_p7 = pnand %p860_p5, %p279_p6  ;;  %s239_s12 = int_to_ptr.hbm [resolvable:$true] %s238_s12 }
  0x1d   : > { %892 = dma.hbm_to_vmem [thread:$0]  (!%p1319_p4), %s239_s12, 8192, %s241_s14, %s1323_s16, %s1212_s17, %s1655_s6, %s1656_s7  }
  0x1e   : > { %s33_s11 = sadd.s32 1, %s1202_s26  ;;  %s36_s13 = sadd.s32 1, %s1206_s27 }
  0x1f   : > { %p34_p8 = scmp.ge.s32.totalorder %s33_s11, 2  ;;  %s43_s12 = sadd.s32 1, %s1190_s23 }
  0x20   : > { %p50_p9 = scmp.ne.s32.totalorder %s1190_s23, %s1186_s22  ;;  %p56_p11 = scmp.ne.s32.totalorder %s1186_s22, %s1182_s21 }
  0x21   : > { %s1715_s11 = smov (%p34_p8, %s33_s11), 0  ;;  %s1717_s13 = smov (!%p34_p8, %s36_s13), %s1206_s27 }
  0x22   : > { %1679 = sst [smem:[#allocation18_spill]] %s1715_s11  ;;  %p1353_p10 = por %p51_p0, %p50_p9 }
  0x23   : > { %p38_p12 = scmp.ge.s32.totalorder %s1717_s13, 2  ;;  %p57_p13 = scmp.eq.s32.totalorder %s1337_s9, 0 }
  0x24   : > { %s66_s17 = ssub.s32 %s1202_s26, %s1715_s11  ;;  %p82_p1 = scmp.ne.s32.totalorder %s1174_s19, %s1170_s18 }
  0x25   : > { %s1719_s13 = smov (%p38_p12, %s1717_s13), 0  ;;  %p1369_p3 = por %p57_p13, %p56_p11 }
  0x26   : > { %1681 = sst [smem:[#allocation19_spill]] %s1719_s13  ;;  %p67_p0 = scmp.eq.s32.totalorder %s66_s17, 0 }
  0x27   : > { %s40_s7 = ssub.s32 %s1206_s27, %s1719_s13  ;;  %p1375_p5 = por %p82_p1, %p57_p13 }
  0x28   : > { %p41_p6 = scmp.eq.s32.totalorder %s40_s7, 0  ;;  %p179_p8 = scmp.eq.s32.totalorder %s1337_s9, 3 }
  0x29   : > { %s1684_s1 = sadd.s32 1, %s1178_s20  ;;  %p185_p2 = scmp.eq.s32.totalorder %s847_s10, 3 }
  0x2a   : > { %s1383_s18 = scalar_select %p67_p0, %s1178_s20, %s1684_s1  }
  0x2b   : > { %s1386_s11 = scalar_select %p41_p6, %s1190_s23, %s43_s12  }
  0x2c   : > { %1685 = sst [smem:[#allocation20_spill]] %s1383_s18  ;;  %p1391_p12 = por %p179_p8, %p50_p9 }
  0x2d   : > { %1686 = sst [smem:[#allocation21_spill]] %s1386_s11  ;;  %s208_s17 = sand.u32 1, %s1190_s23  }
  0x2e   : > { %s1687_s5 = scalar_select %p1391_p12, 1, 0 }
  0x2f   : > { %s873_s13 = sshll.u32 %s1206_s27, 4  ;;  %p1400_p13 = por %p185_p2, %p56_p11 }
  0x30   : > { %1688 = sst [smem:[#allocation22_spill]] %s1687_s5  ;;  %s850_s25 = sshll.u32 %s208_s17, 4 }
  0x31   : > { %s1689_s7 = scalar_select %p1400_p13, 1, 0 }
  0x32   : > { %s217_s12 = scalar_lea.hbm %s1649_s0, %s873_s13  ;;  %s212_s18 = scalar_lea.vmem [#allocation3], %s850_s25 }
  0x33   : > { %1690 = sst [smem:[#allocation23_spill]] %s1689_s7  ;;  %s219_s11 = sshll.u32 %s217_s12, 4  ;;  %s220_s11 = int_to_ptr.hbm [resolvable:$true] %s219_s11 }
  0x34   : > { %s221_s20 = sshll.u32 %s212_s18, 4  ;;  %p1691_p9 = scmp.lt.s32.totalorder %s1210_s28, 4  ;;  %s222_s20 = int_to_ptr.vmem [resolvable:$true] %s221_s20 }
  0x35   : > { %s876_s10 = sshll.u32 %s1202_s26, 9  ;;  %s209_s21 = scalar_lea.sflag [#allocation4], %s208_s17 }
  0x36   : > { %p887_p1 = pnand %p1691_p9, %p1353_p10  ;;  %s268_s7 = scalar_lea.hbm %s1652_s3, %s876_s10 }
  0x37   : > { %s269_s5 = sshll.u32 %s268_s7, 4  ;;  %s262_s4 = scalar_lea.vmem [#allocation8], %s1311_s8  ;;  %s270_s5 = int_to_ptr.hbm [resolvable:$true] %s269_s5 }
  0x38   : > { %889 = dma.hbm_to_vmem [thread:$0]  (!%p887_p1), %s220_s11, 256, %s222_s20, %s209_s21  }
  0x39   : > { %s271_s13 = sshll.u32 %s262_s4, 4  ;;  %s1692_s1 = smov 16   ;;  %s272_s13 = int_to_ptr.vmem [resolvable:$true] %s271_s13 }
  0x3a   : > { %s1693_s25 = smov 256   ;;  %283 = sbr.rel (%p1332_p7) target bundleno = 426 (0x1aa), region = 40 }
  0x3b   : > { %895 = dma.hbm_to_vmem [thread:$0]  (!%p1319_p4), %s270_s5, 8192, %s272_s13, %s1323_s16, %s1693_s25, %s1693_s25, %s1692_s1  }
  0x3c   : > { %s1425_s14 = sand.u32 (!%p1332_p7), 1, %s1186_s22  }
  0x3d   : > { %s861_s20 = sshll.u32 (!%p1332_p7), %s1425_s14, 4  ;;  %s286_s21 = scalar_lea.sflag (!%p1332_p7), [#allocation4], %s1425_s14 }
  0x3e   : > { %s1429_s23 = scalar_lea.vmem (!%p1332_p7), [#allocation3], %s861_s20 }
  0x3f   : > { %1157 = dma.done.wait (%p1369_p3), %s286_s21, 256  }
  0x40   : > { %1159 = vsyncadd (%p1369_p3), %s286_s21, 4294967040  ;;  %s295_s5 = sand.u32 1, %s1337_s9   ;;  %s297_s27 = sand.u32 1, %s1174_s19  }
  0x41   : > { %s862_s8 = sshll.u32 %s297_s27, 9  ;;  %s296_s15 = scalar_lea.sflag [#allocation7], %s295_s5 }
  0x42   : > { %s1437_s16 = scalar_lea.vmem [#allocation6], %s862_s8 }
  0x43   : > { %1161 = dma.done.wait (%p1375_p5), %s296_s15, 16384  }
  0x44   : > { %1163 = vsyncadd (%p1375_p5), %s296_s15, 4294950912  ;;  %s865_s30 = sshll.u32 %s1194_s24, 1  ;;  %s1450_s18 = scalar_lea.vmem [#allocation8], %s862_s8 }
  0x45   : > { %p353_p2 = scmp.lt.s32.totalorder %s865_s30, 3  ;;  %s1452_s17 = scalar_lea.vmem [#allocation9], %s861_s20 }
  0x46   : > { %p866_p4 = scmp.ne.s32.totalorder %s1194_s24, 0 }
  0x47   : > { %s1721_s30 = smov (!%p353_p2, %s865_s30), 3 }
  0x48   : > { %s355_s9 = scalar_lea.vmem %s1651_s2, %s1721_s30  ;;  %361 = sbr.rel (%p866_p4) target bundleno = 80 (0x50), region = 56 }
  0x4d   : > { %v1215_v0 = vmov 0.0  }
  0x4e   : > { %362 = vst [vmem:[#allocation2] sm:$0xff] %v1215_v0 }
  0x4f   : > { %363 = vst [vmem:[#allocation2 + $0x8] sm:$0xff] %v1215_v0 }
  0x50 PF: > { %v394_v1 = vld [vmem:[%s1437_s16 + $0xe0] sm:$0xff]  ;;  %v396_v2 = vld [vmem:[%s1437_s16 + $0xf0] sm:$0xff]  ;;  %v395_v6 = vld [vmem:[%s1437_s16 + $0xe8] sm:$0xff]  ;;  %p867_p7 = scmp.ne.s32.totalorder %s1194_s24, 1 }
  0x51   : > { %v426_v3 = vld [vmem:[%s1437_s16 + $0x1e0] sm:$0xff]  ;;  %v446_v4 = vpack.c.bf16 %v396_v2, %v394_v1  ;;  %v428_v5 = vld [vmem:[%s1437_s16 + $0x1f0] sm:$0xff]  ;;  %v397_v7 = vld [vmem:[%s1437_s16 + $0xf8] sm:$0xff]  ;;  %s1694_s4 = sld [smem:[#allocation25_spill]] (!%p867_p7) }
  0x52   : > { %v462_v8 = vpack.c.bf16 %v428_v5, %v426_v3  ;;  %v447_v9 = vpack.c.bf16 %v397_v7, %v395_v6  ;;  %v427_v10 = vld [vmem:[%s1437_s16 + $0x1e8] sm:$0xff]  ;;  %v429_v11 = vld [vmem:[%s1437_s16 + $0x1f8] sm:$0xff]  ;;  %v390_v12 = vld [vmem:[%s1437_s16 + $0xc0] sm:$0xff] }
  0x53   : > { %470 = vmatpush.bf16.msra.mxu0 %v446_v4  ;;  %v463_v13 = vpack.c.bf16 %v429_v11, %v427_v10  ;;  %v392_v14 = vld [vmem:[%s1437_s16 + $0xd0] sm:$0xff]  ;;  %v422_v15 = vld [vmem:[%s1437_s16 + $0x1c0] sm:$0xff]  ;;  %v391_v19 = vld [vmem:[%s1437_s16 + $0xc8] sm:$0xff] }
  0x54   : > { %v424_v16 = vld [vmem:[%s1437_s16 + $0x1d0] sm:$0xff]  ;;  %483 = vmatpush.bf16.msra.mxu1 %v462_v8  ;;  %496 = vmatpush.bf16.msra.mxu2 %v447_v9  ;;  %v444_v17 = vpack.c.bf16 %v392_v14, %v390_v12  ;;  %v393_v20 = vld [vmem:[%s1437_s16 + $0xd8] sm:$0xff]  ;;  %v423_v21 = vld [vmem:[%s1437_s16 + $0x1c8] sm:$0xff] }
  0x55   : > { %v460_v18 = vpack.c.bf16 %v424_v16, %v422_v15  ;;  %509 = vmatpush.bf16.msra.mxu3 %v463_v13  ;;  %v445_v22 = vpack.c.bf16 %v393_v20, %v391_v19  ;;  %v425_v23 = vld [vmem:[%s1437_s16 + $0x1d8] sm:$0xff]  ;;  %v386_v24 = vld [vmem:[%s1437_s16 + $0xa0] sm:$0xff]  ;;  %v388_v25 = vld [vmem:[%s1437_s16 + $0xb0] sm:$0xff] }
  0x56   : > { %v461_v26 = vpack.c.bf16 %v425_v23, %v423_v21  ;;  %v418_v27 = vld [vmem:[%s1437_s16 + $0x1a0] sm:$0xff]  ;;  %v420_v28 = vld [vmem:[%s1437_s16 + $0x1b0] sm:$0xff]  ;;  %v387_v29 = vld [vmem:[%s1437_s16 + $0xa8] sm:$0xff]  ;;  %v442_v30 = vpack.c.bf16 %v388_v25, %v386_v24 }
  0x57   : > { %471 = vmatpush.bf16.msra.mxu0 %v444_v17  ;;  %v389_v31 = vld [vmem:[%s1437_s16 + $0xb8] sm:$0xff]  ;;  %v419_v32 = vld [vmem:[%s1437_s16 + $0x1a8] sm:$0xff]  ;;  %v458_v34 = vpack.c.bf16 %v420_v28, %v418_v27  ;;  %v382_v36 = vld [vmem:[%s1437_s16 + $0x80] sm:$0xff] }
  0x58   : > { %v421_v33 = vld [vmem:[%s1437_s16 + $0x1b8] sm:$0xff]  ;;  %484 = vmatpush.bf16.msra.mxu1 %v460_v18  ;;  %497 = vmatpush.bf16.msra.mxu2 %v445_v22  ;;  %v443_v35 = vpack.c.bf16 %v389_v31, %v387_v29  ;;  %v384_v37 = vld [vmem:[%s1437_s16 + $0x90] sm:$0xff]  ;;  %v414_v38 = vld [vmem:[%s1437_s16 + $0x180] sm:$0xff] }
  0x59   : > { %510 = vmatpush.bf16.msra.mxu3 %v461_v26  ;;  %v459_v39 = vpack.c.bf16 %v421_v33, %v419_v32  ;;  %v416_v40 = vld [vmem:[%s1437_s16 + $0x190] sm:$0xff]  ;;  %v383_v41 = vld [vmem:[%s1437_s16 + $0x88] sm:$0xff]  ;;  %v385_v42 = vld [vmem:[%s1437_s16 + $0x98] sm:$0xff]  ;;  %v440_v45 = vpack.c.bf16 %v384_v37, %v382_v36 }
  0x5a   : > { %v415_v43 = vld [vmem:[%s1437_s16 + $0x188] sm:$0xff]  ;;  %v417_v44 = vld [vmem:[%s1437_s16 + $0x198] sm:$0xff]  ;;  %v456_v46 = vpack.c.bf16 %v416_v40, %v414_v38  ;;  %v441_v47 = vpack.c.bf16 %v385_v42, %v383_v41  ;;  %v378_v48 = vld [vmem:[%s1437_s16 + $0x60] sm:$0xff] }
  0x5b   : > { %472 = vmatpush.bf16.msra.mxu0 %v442_v30  ;;  %v380_v49 = vld [vmem:[%s1437_s16 + $0x70] sm:$0xff]  ;;  %v410_v50 = vld [vmem:[%s1437_s16 + $0x160] sm:$0xff]  ;;  %v457_v51 = vpack.c.bf16 %v417_v44, %v415_v43  ;;  %v379_v53 = vld [vmem:[%s1437_s16 + $0x68] sm:$0xff] }
  0x5c   : > { %485 = vmatpush.bf16.msra.mxu1 %v458_v34  ;;  %498 = vmatpush.bf16.msra.mxu2 %v443_v35  ;;  %v412_v52 = vld [vmem:[%s1437_s16 + $0x170] sm:$0xff]  ;;  %v381_v54 = vld [vmem:[%s1437_s16 + $0x78] sm:$0xff]  ;;  %v411_v55 = vld [vmem:[%s1437_s16 + $0x168] sm:$0xff]  ;;  %v438_v57 = vpack.c.bf16 %v380_v49, %v378_v48 }
  0x5d   : > { %511 = vmatpush.bf16.msra.mxu3 %v459_v39  ;;  %v413_v56 = vld [vmem:[%s1437_s16 + $0x178] sm:$0xff]  ;;  %v454_v58 = vpack.c.bf16 %v412_v52, %v410_v50  ;;  %v439_v59 = vpack.c.bf16 %v381_v54, %v379_v53  ;;  %v374_v60 = vld [vmem:[%s1437_s16 + $0x40] sm:$0xff]  ;;  %v376_v61 = vld [vmem:[%s1437_s16 + $0x50] sm:$0xff] }
  0x5e   : > { %v406_v62 = vld [vmem:[%s1437_s16 + $0x140] sm:$0xff]  ;;  %v455_v63 = vpack.c.bf16 %v413_v56, %v411_v55  ;;  %v408_v0 = vld [vmem:[%s1437_s16 + $0x150] sm:$0xff]  ;;  %v375_v1 = vld [vmem:[%s1437_s16 + $0x48] sm:$0xff]  ;;  %v436_v5 = vpack.c.bf16 %v376_v61, %v374_v60 }
  0x5f   : > { %473 = vmatpush.bf16.msra.mxu0 %v440_v45  ;;  %v377_v2 = vld [vmem:[%s1437_s16 + $0x58] sm:$0xff]  ;;  %v407_v3 = vld [vmem:[%s1437_s16 + $0x148] sm:$0xff]  ;;  %v452_v6 = vpack.c.bf16 %v408_v0, %v406_v62  ;;  %v370_v8 = vld [vmem:[%s1437_s16 + $0x20] sm:$0xff] }
  0x60   : > { %486 = vmatpush.bf16.msra.mxu1 %v456_v46  ;;  %499 = vmatpush.bf16.msra.mxu2 %v441_v47  ;;  %v409_v4 = vld [vmem:[%s1437_s16 + $0x158] sm:$0xff]  ;;  %v437_v7 = vpack.c.bf16 %v377_v2, %v375_v1  ;;  %v372_v9 = vld [vmem:[%s1437_s16 + $0x30] sm:$0xff]  ;;  %v402_v10 = vld [vmem:[%s1437_s16 + $0x120] sm:$0xff] }
  0x61   : > { %512 = vmatpush.bf16.msra.mxu3 %v457_v51  ;;  %v453_v11 = vpack.c.bf16 %v409_v4, %v407_v3  ;;  %v404_v12 = vld [vmem:[%s1437_s16 + $0x130] sm:$0xff]  ;;  %v371_v13 = vld [vmem:[%s1437_s16 + $0x28] sm:$0xff]  ;;  %v373_v14 = vld [vmem:[%s1437_s16 + $0x38] sm:$0xff]  ;;  %v434_v17 = vpack.c.bf16 %v372_v9, %v370_v8 }
  0x62   : > { %v403_v15 = vld [vmem:[%s1437_s16 + $0x128] sm:$0xff]  ;;  %v405_v16 = vld [vmem:[%s1437_s16 + $0x138] sm:$0xff]  ;;  %v366_v18 = vld [vmem:[%s1437_s16] sm:$0xff]  ;;  %v450_v19 = vpack.c.bf16 %v404_v12, %v402_v10  ;;  %v435_v20 = vpack.c.bf16 %v373_v14, %v371_v13 }
  0x63   : > { %474 = vmatpush.bf16.msra.mxu0 %v438_v57  ;;  %v368_v21 = vld [vmem:[%s1437_s16 + $0x10] sm:$0xff]  ;;  %v398_v22 = vld [vmem:[%s1437_s16 + $0x100] sm:$0xff]  ;;  %v451_v24 = vpack.c.bf16 %v405_v16, %v403_v15  ;;  %v367_v25 = vld [vmem:[%s1437_s16 + $0x8] sm:$0xff] }
  0x64   : > { %487 = vmatpush.bf16.msra.mxu1 %v454_v58  ;;  %500 = vmatpush.bf16.msra.mxu2 %v439_v59  ;;  %v400_v23 = vld [vmem:[%s1437_s16 + $0x110] sm:$0xff]  ;;  %v369_v26 = vld [vmem:[%s1437_s16 + $0x18] sm:$0xff]  ;;  %v399_v27 = vld [vmem:[%s1437_s16 + $0x108] sm:$0xff]  ;;  %v432_v31 = vpack.c.bf16 %v368_v21, %v366_v18 }
  0x65   : > { %513 = vmatpush.bf16.msra.mxu3 %v455_v63  ;;  %v401_v28 = vld [vmem:[%s1437_s16 + $0x118] sm:$0xff]  ;;  %v552_v29 = vld [vmem:[%s1450_s18 + $0xe0] sm:$0xff]  ;;  %v554_v30 = vld [vmem:[%s1450_s18 + $0xf0] sm:$0xff]  ;;  %v448_v35 = vpack.c.bf16 %v400_v23, %v398_v22  ;;  %v433_v36 = vpack.c.bf16 %v369_v26, %v367_v25 }
  0x66   : > { %v364_v32 = vld [vmem:[%s1429_s23] sm:$0xff]  ;;  %v553_v33 = vld [vmem:[%s1450_s18 + $0xe8] sm:$0xff]  ;;  %v555_v34 = vld [vmem:[%s1450_s18 + $0xf8] sm:$0xff]  ;;  %v449_v38 = vpack.c.bf16 %v401_v28, %v399_v27  ;;  %v604_v39 = vpack.c.bf16 %v554_v30, %v552_v29 }
  0x67   : > { %475 = vmatpush.bf16.msra.mxu0 %v436_v5  ;;  %v365_v37 = vld [vmem:[%s1429_s23 + $0x8] sm:$0xff]  ;;  %v548_v40 = vld [vmem:[%s1450_s18 + $0xc0] sm:$0xff]  ;;  %v586_v42 = vld [vmem:[%s1450_s18 + $0x1f0] sm:$0xff]  ;;  %v430_v43 = vpack.c.bf16 %v364_v32, %v364_v32  ;;  %v605_v44 = vpack.c.bf16 %v555_v34, %v553_v33 }
  0x68   : > { %488 = vmatpush.bf16.msra.mxu1 %v452_v6  ;;  %501 = vmatpush.bf16.msra.mxu2 %v437_v7  ;;  %v584_v41 = vld [vmem:[%s1450_s18 + $0x1e0] sm:$0xff]  ;;  %v550_v45 = vld [vmem:[%s1450_s18 + $0xd0] sm:$0xff]  ;;  %v585_v46 = vld [vmem:[%s1450_s18 + $0x1e8] sm:$0xff]  ;;  %v431_v48 = vpack.c.bf16 %v365_v37, %v365_v37 }
  0x69   : > { %514 = vmatpush.bf16.msra.mxu3 %v453_v11  ;;  %v587_v47 = vld [vmem:[%s1450_s18 + $0x1f8] sm:$0xff]  ;;  %v549_v49 = vld [vmem:[%s1450_s18 + $0xc8] sm:$0xff]  ;;  %v620_v51 = vpack.c.bf16 %v586_v42, %v584_v41  ;;  %v602_v52 = vpack.c.bf16 %v550_v45, %v548_v40  ;;  %v544_v54 = vld [vmem:[%s1450_s18 + $0xa0] sm:$0xff] }
  0x6a   : > { %v551_v50 = vld [vmem:[%s1450_s18 + $0xd8] sm:$0xff]  ;;  %v621_v53 = vpack.c.bf16 %v587_v47, %v585_v46  ;;  %v580_v55 = vld [vmem:[%s1450_s18 + $0x1c0] sm:$0xff]  ;;  %v582_v56 = vld [vmem:[%s1450_s18 + $0x1d0] sm:$0xff] }
  0x6b   : > { %476 = vmatpush.bf16.msra.mxu0 %v434_v17  ;;  %v603_v57 = vpack.c.bf16 %v551_v50, %v549_v49  ;;  %v546_v58 = vld [vmem:[%s1450_s18 + $0xb0] sm:$0xff]  ;;  %v581_v59 = vld [vmem:[%s1450_s18 + $0x1c8] sm:$0xff]  ;;  %v583_v60 = vld [vmem:[%s1450_s18 + $0x1d8] sm:$0xff]  ;;  %v618_v63 = vpack.c.bf16 %v582_v56, %v580_v55 }
  0x6c   : > { %489 = vmatpush.bf16.msra.mxu1 %v450_v19  ;;  %502 = vmatpush.bf16.msra.mxu2 %v435_v20  ;;  %v545_v61 = vld [vmem:[%s1450_s18 + $0xa8] sm:$0xff]  ;;  %v547_v62 = vld [vmem:[%s1450_s18 + $0xb8] sm:$0xff]  ;;  %v600_v0 = vpack.c.bf16 %v546_v58, %v544_v54  ;;  %v619_v1 = vpack.c.bf16 %v583_v60, %v581_v59  ;;  %v540_v2 = vld [vmem:[%s1450_s18 + $0x80] sm:$0xff] }
  0x6d   : > { %515 = vmatpush.bf16.msra.mxu3 %v451_v24  ;;  %v576_v3 = vld [vmem:[%s1450_s18 + $0x1a0] sm:$0xff]  ;;  %v578_v4 = vld [vmem:[%s1450_s18 + $0x1b0] sm:$0xff]  ;;  %v601_v5 = vpack.c.bf16 %v547_v62, %v545_v61  ;;  %v577_v7 = vld [vmem:[%s1450_s18 + $0x1a8] sm:$0xff] }
  0x6e   : > { %v542_v6 = vld [vmem:[%s1450_s18 + $0x90] sm:$0xff]  ;;  %v579_v8 = vld [vmem:[%s1450_s18 + $0x1b8] sm:$0xff]  ;;  %v541_v9 = vld [vmem:[%s1450_s18 + $0x88] sm:$0xff]  ;;  %v616_v11 = vpack.c.bf16 %v578_v4, %v576_v3 }
  0x6f   : > { %477 = vmatpush.bf16.msra.mxu0 %v432_v31  ;;  %v543_v10 = vld [vmem:[%s1450_s18 + $0x98] sm:$0xff]  ;;  %v598_v12 = vpack.c.bf16 %v542_v6, %v540_v2  ;;  %v617_v13 = vpack.c.bf16 %v579_v8, %v577_v7  ;;  %v536_v14 = vld [vmem:[%s1450_s18 + $0x60] sm:$0xff]  ;;  %v574_v16 = vld [vmem:[%s1450_s18 + $0x190] sm:$0xff] }
  0x70   : > { %490 = vmatpush.bf16.msra.mxu1 %v448_v35  ;;  %503 = vmatpush.bf16.msra.mxu2 %v433_v36  ;;  %v572_v15 = vld [vmem:[%s1450_s18 + $0x180] sm:$0xff]  ;;  %v599_v17 = vpack.c.bf16 %v543_v10, %v541_v9  ;;  %v538_v18 = vld [vmem:[%s1450_s18 + $0x70] sm:$0xff]  ;;  %v573_v19 = vld [vmem:[%s1450_s18 + $0x188] sm:$0xff] }
  0x71   : > { %516 = vmatpush.bf16.msra.mxu3 %v449_v38  ;;  %v575_v20 = vld [vmem:[%s1450_s18 + $0x198] sm:$0xff]  ;;  %v537_v21 = vld [vmem:[%s1450_s18 + $0x68] sm:$0xff]  ;;  %v614_v23 = vpack.c.bf16 %v574_v16, %v572_v15  ;;  %v596_v24 = vpack.c.bf16 %v538_v18, %v536_v14  ;;  %v532_v27 = vld [vmem:[%s1450_s18 + $0x40] sm:$0xff] }
  0x72   : > { %478 = vmatmul.bf16.vlgmr.msra.gmra.mxu0 %v430_v43  ;;  %v539_v22 = vld [vmem:[%s1450_s18 + $0x78] sm:$0xff]  ;;  %v615_v25 = vpack.c.bf16 %v575_v20, %v573_v19  ;;  %v534_v28 = vld [vmem:[%s1450_s18 + $0x50] sm:$0xff]  ;;  %v533_v29 = vld [vmem:[%s1450_s18 + $0x48] sm:$0xff] }
  0x73   : > { %624 = vmatpush.bf16.msrb.mxu0 %v604_v39  ;;  %491 = vmatmul.bf16.vlgmr.msra.gmra.mxu1 %v431_v48  ;;  %v597_v26 = vpack.c.bf16 %v539_v22, %v537_v21  ;;  %v535_v30 = vld [vmem:[%s1450_s18 + $0x58] sm:$0xff]  ;;  %v594_v31 = vpack.c.bf16 %v534_v28, %v532_v27  ;;  %v568_v33 = vld [vmem:[%s1450_s18 + $0x160] sm:$0xff]  ;;  %v570_v34 = vld [vmem:[%s1450_s18 + $0x170] sm:$0xff] }
  0x74   : > { %650 = vmatpush.bf16.msrb.mxu2 %v605_v44  ;;  %517 = vmatmul.bf16.vlgmr.msra.gmra.mxu3 %v431_v48  ;;  %v595_v32 = vpack.c.bf16 %v535_v30, %v533_v29  ;;  %v569_v35 = vld [vmem:[%s1450_s18 + $0x168] sm:$0xff]  ;;  %v612_v36 = vpack.c.bf16 %v570_v34, %v568_v33  ;;  %v571_v37 = vld [vmem:[%s1450_s18 + $0x178] sm:$0xff]  ;;  %v528_v39 = vld [vmem:[%s1450_s18 + $0x20] sm:$0xff] }
  0x75   : > { %504 = vmatmul.bf16.vlgmr.msra.gmra.mxu2 %v430_v43  ;;  %637 = vmatpush.bf16.msrb.mxu1 %v620_v51  ;;  %v613_v38 = vpack.c.bf16 %v571_v37, %v569_v35  ;;  %v530_v40 = vld [vmem:[%s1450_s18 + $0x30] sm:$0xff]  ;;  %v529_v41 = vld [vmem:[%s1450_s18 + $0x28] sm:$0xff]  ;;  %v531_v43 = vld [vmem:[%s1450_s18 + $0x38] sm:$0xff] }
  0x76   : > { %663 = vmatpush.bf16.msrb.mxu3 %v621_v53  ;;  %v592_v42 = vpack.c.bf16 %v530_v40, %v528_v39  ;;  %v593_v44 = vpack.c.bf16 %v531_v43, %v529_v41  ;;  %v564_v45 = vld [vmem:[%s1450_s18 + $0x140] sm:$0xff]  ;;  %v566_v46 = vld [vmem:[%s1450_s18 + $0x150] sm:$0xff]  ;;  %v565_v47 = vld [vmem:[%s1450_s18 + $0x148] sm:$0xff] }
  0x77   : > { %625 = vmatpush.bf16.msrb.mxu0 %v602_v52  ;;  %v610_v48 = vpack.c.bf16 %v566_v46, %v564_v45  ;;  %v567_v49 = vld [vmem:[%s1450_s18 + $0x158] sm:$0xff]  ;;  %v524_v51 = vld [vmem:[%s1450_s18] sm:$0xff]  ;;  %v526_v52 = vld [vmem:[%s1450_s18 + $0x10] sm:$0xff] }
  0x78   : > { %651 = vmatpush.bf16.msrb.mxu2 %v603_v57  ;;  %v611_v50 = vpack.c.bf16 %v567_v49, %v565_v47  ;;  %v525_v53 = vld [vmem:[%s1450_s18 + $0x8] sm:$0xff]  ;;  %v590_v54 = vpack.c.bf16 %v526_v52, %v524_v51  ;;  %v527_v55 = vld [vmem:[%s1450_s18 + $0x18] sm:$0xff]  ;;  %v560_v57 = vld [vmem:[%s1450_s18 + $0x120] sm:$0xff] }
  0x79   : > { %638 = vmatpush.bf16.msrb.mxu1 %v618_v63  ;;  %v591_v56 = vpack.c.bf16 %v527_v55, %v525_v53  ;;  %v562_v58 = vld [vmem:[%s1450_s18 + $0x130] sm:$0xff]  ;;  %v561_v59 = vld [vmem:[%s1450_s18 + $0x128] sm:$0xff]  ;;  %v563_v61 = vld [vmem:[%s1450_s18 + $0x138] sm:$0xff] }
  0x7a   : > { %664 = vmatpush.bf16.msrb.mxu3 %v619_v1  ;;  %v608_v60 = vpack.c.bf16 %v562_v58, %v560_v57  ;;  %v609_v62 = vpack.c.bf16 %v563_v61, %v561_v59  ;;  %v556_v63 = vld [vmem:[%s1450_s18 + $0x100] sm:$0xff]  ;;  %v557_v1 = vld [vmem:[%s1450_s18 + $0x108] sm:$0xff]  ;;  %v559_v3 = vld [vmem:[%s1450_s18 + $0x118] sm:$0xff] }
  0x7b   : > { %626 = vmatpush.bf16.msrb.mxu0 %v600_v0  ;;  %v558_v0 = vld [vmem:[%s1450_s18 + $0x110] sm:$0xff]  ;;  %v607_v4 = vpack.c.bf16 %v559_v3, %v557_v1 }
  0x7c   : > { %652 = vmatpush.bf16.msrb.mxu2 %v601_v5  ;;  %v606_v2 = vpack.c.bf16 %v558_v0, %v556_v63  ;;  %v464_v5 = vld [vmem:[%s355_s9] sm:$0x3] }
  0x7d   : > { %639 = vmatpush.bf16.msrb.mxu1 %v616_v11  ;;  %v466_v6 = vperm.slane %v464_v5, 0  ;;  %v467_v11 = vperm.slane %v464_v5, 1 }
  0x7e   : > { %665 = vmatpush.bf16.msrb.mxu3 %v617_v13 }
  0x7f   : > { %627 = vmatpush.bf16.msrb.mxu0 %v598_v12 }
  0x80   : > { %653 = vmatpush.bf16.msrb.mxu2 %v599_v17 }
  0x81   : > { %640 = vmatpush.bf16.msrb.mxu1 %v614_v23 }
  0x82   : > { %666 = vmatpush.bf16.msrb.mxu3 %v615_v25 }
  0x83   : > { %628 = vmatpush.bf16.msrb.mxu0 %v596_v24 }
  0x84   : > { %654 = vmatpush.bf16.msrb.mxu2 %v597_v26  ;;  %v622_v26 = vld [vmem:[#allocation2] sm:$0xff] }
  0x85   : > { %641 = vmatpush.bf16.msrb.mxu1 %v612_v36 }
  0x86   : > { %667 = vmatpush.bf16.msrb.mxu3 %v613_v38 }
  0x87   : > { %629 = vmatpush.bf16.msrb.mxu0 %v594_v31  ;;  %v623_v31 = vld [vmem:[#allocation2 + $0x8] sm:$0xff] }
  0x88   : > { %655 = vmatpush.bf16.msrb.mxu2 %v595_v32 }
  0x89   : > { %642 = vmatpush.bf16.msrb.mxu1 %v610_v48 }
  0x8a   : > { %668 = vmatpush.bf16.msrb.mxu3 %v611_v50 }
  0x8b   : > { %630 = vmatpush.bf16.msrb.mxu0 %v592_v42 }
  0x8c   : > { %656 = vmatpush.bf16.msrb.mxu2 %v593_v44 }
  0x8d   : > { %643 = vmatpush.bf16.msrb.mxu1 %v608_v60 }
  0x8e   : > { %669 = vmatpush.bf16.msrb.mxu3 %v609_v62 }
  0x8f   : > { %631 = vmatpush.bf16.msrb.mxu0 %v590_v54 }
  0x90   : > { %657 = vmatpush.bf16.msrb.mxu2 %v591_v56 }
  0x91   : > { %644 = vmatpush.bf16.msrb.mxu1 %v606_v2 }
  0x92   : > { %670 = vmatpush.bf16.msrb.mxu3 %v607_v4 }
  0xef   : > { %v479_v7 = vpop.f32.mrf.mxu0 }
  0xf0   : > { %v480_v8 = vadd.f32 %v479_v7, %v466_v6  ;;  %v492_v9 = vpop.f32.mrf.mxu1 }
  0xf2   : > { %v493_v10 = vadd.f32 %v492_v9, %v480_v8 }
  0xf4   : > { %v522_v12 = vmax.f32 %v493_v10, 0.0 }
  0xf6   : > { %v588_v13 = vpack.c.bf16 %v522_v12, %v522_v12 }
  0xf7   : > { %v518_v16 = vpop.f32.mrf.mxu3  ;;  %v481_v17 = vpop.f32.mrf.mxu0 }
  0xf8   : > { %v505_v14 = vpop.f32.mrf.mxu2  ;;  %v494_v18 = vpop.f32.mrf.mxu1  ;;  %632 = vmatmul.bf16.vlgmr.msrb.gmra.mxu0 %v588_v13  ;;  %658 = vmatmul.bf16.vlgmr.msrb.gmra.mxu2 %v588_v13 }
  0xf9   : > { %v506_v15 = vadd.f32 %v505_v14, %v467_v11 }
  0xfb   : > { %v519_v19 = vadd.f32 %v518_v16, %v506_v15 }
  0xfd   : > { %v523_v20 = vmax.f32 %v519_v19, 0.0 }
  0xff   : > { %v589_v21 = vpack.c.bf16 %v523_v20, %v523_v20  ;;  %v520_v23 = vpop.f32.mrf.mxu3 }
 0x100   : > { %v507_v22 = vpop.f32.mrf.mxu2 }
 0x101   : > { %645 = vmatmul.bf16.vlgmr.msrb.gmra.mxu1 %v589_v21  ;;  %671 = vmatmul.bf16.vlgmr.msrb.gmra.mxu3 %v589_v21 }
 0x175   : > { %v633_v24 = vpop.f32.mrf.mxu0 }
 0x17b   : > { %v659_v25 = vpop.f32.mrf.mxu2 }
 0x17d   : > { %v635_v29 = vpop.f32.mrf.mxu0 }
 0x17e   : > { %v646_v27 = vpop.f32.mrf.mxu1 }
 0x17f   : > { %v647_v28 = vadd.f32 %v646_v27, %v633_v24 }
 0x181   : > { %v676_v30 = vadd.f32 %v647_v28, %v622_v26 }
 0x183   : > { %678 = vst [vmem:[#allocation2] sm:$0xff] %v676_v30  ;;  %v661_v34 = vpop.f32.mrf.mxu2 }
 0x184   : > { %v672_v32 = vpop.f32.mrf.mxu3 }
 0x185   : > { %v673_v33 = vadd.f32 %v672_v32, %v659_v25 }
 0x186   : > { %v648_v35 = vpop.f32.mrf.mxu1 }
 0x187   : > { %v677_v36 = vadd.f32 %v673_v33, %v623_v31 }
 0x188   : > { %683 = sbr.rel (%p867_p7) target bundleno = 405 (0x195), region = 60 }
 0x189   : > { %679 = vst [vmem:[#allocation2 + $0x8] sm:$0xff] %v677_v36 }
 0x18c   : > { %v674_v37 = vpop.f32.mrf.mxu3 }
 0x18d   : > { %v684_v38 = vld [vmem:[#allocation2] sm:$0xff] }
 0x18e   : > { %v686_v39 = vld [vmem:[%s1694_s4] sm:$0x3] }
 0x18f   : > { %v688_v41 = vperm.slane %v686_v39, 0  ;;  %v689_v42 = vperm.slane %v686_v39, 1 }
 0x190   : > { %v685_v40 = vld [vmem:[#allocation2 + $0x8] sm:$0xff] }
 0x191   : > { %v692_v43 = vadd.f32 %v688_v41, %v684_v38  ;;  %v693_v44 = vadd.f32 %v689_v42, %v685_v40 }
 0x193   : > { %694 = vst [vmem:[%s1452_s17] sm:$0xff] %v692_v43 }
 0x194   : > { %695 = vst [vmem:[%s1452_s17 + $0x8] sm:$0xff] %v693_v44 }
 0x195 PF: > { %s1695_s13 = sld [smem:[#allocation16_spill]]  ;;  %s710_s27 = sshll.u32 %s1452_s17, 4  ;;  %s711_s27 = int_to_ptr.vmem [resolvable:$true] %s710_s27 }
 0x196   : > { %s1697_s21 = sld [smem:[#allocation26_spill]]  ;;  %s697_s15 = scalar_lea.sflag [#allocation5], %s1425_s14 }
 0x19b   : > { %s877_s1 = sshll.u32 %s1695_s13, 4 }
 0x19c   : > { %s1698_s5 = smov %s1697_s21  ;;  %s708_s23 = scalar_lea.hbm %s1697_s21, %s877_s1 }
 0x19d   : > { %s712_s8 = sshll.u32 %s708_s23, 4  ;;  %s1104_s9 = scalar_lea.hbm %s1698_s5, 32  ;;  %s713_s8 = int_to_ptr.hbm [resolvable:$true] %s712_s8 }
 0x19e   : > { %s1098_s16 = sshra.s32 %s713_s8, 4  ;;  %s1099_s16 = int_to_ptr.hbm [resolvable:$true] %s1098_s16 }
 0x19f   : > { %s1100_s30 = scalar_lea.hbm %s1099_s16, 16  ;;  %p1105_p0 = scmp.lt.s32.totalorder %s1099_s16, %s1698_s5 }
 0x1a0   : > { %p1101_p10 = scmp.ne.s32.totalorder %s1099_s16, %s1100_s30  ;;  %p1106_p5 = scmp.lt.s32.totalorder %s1104_s9, %s1100_s30 }
 0x1a2   : > { %p1102_p11 = pnand %p1101_p10, %p1391_p12  ;;  %p1107_p6 = por %p1106_p5, %p1105_p0 }
 0x1a4   : > { %p1103_p3 = pneg %p1102_p11 }
 0x1a6   : > { %p1108_p8 = pnand %p1107_p6, %p1103_p3 }
 0x1a8   : > { %1111 = shalt.err (!%p1108_p8)
}
 0x1a9   : > { %884 = dma.vmem_to_hbm [thread:$0]  (%p1391_p12), %s711_s27, 256, %s713_s8, %s697_s15  }
 0x1aa PF: > { %s1699_s14 = sld [smem:[#allocation14_spill]]  ;;  %p901_p9 = scmp.ge.s32.totalorder %s1210_s28, 2 }
 0x1ac   : > { %p897_p1 = pnand %p901_p9, %p1400_p13 }
 0x1ae   : > { %p898_p2 = pneg %p897_p1 }
 0x1b0   : > { %s724_s7 = sand.u32 1, %s1699_s14  }
 0x1b1   : > { %s725_s12 = scalar_lea.sflag [#allocation5], %s724_s7 }
 0x1b2   : > { %1165 = dma.done.wait (%p898_p2), %s725_s12, 256  }
 0x1b3   : > { %1167 = vsyncadd (%p898_p2), %s725_s12, 4294967040  ;;  %s24_s28 = sadd.s32 1, %s1210_s28   ;;  %s1701_s10 = sld [smem:[#allocation13_spill]] }
 0x1b4   : > { %p21_p4 = scmp.ge.s32.totalorder %s24_s28, 6   ;;  %s1702_s20 = sld [smem:[#allocation20_spill]] }
 0x1b5   : > { %s1703_s4 = sld [smem:[#allocation15_spill]]  ;;  %s1708_s18 = smov %s1174_s19 }
 0x1b6   : > { %s1704_s23 = sld [smem:[#allocation21_spill]]  ;;  %s1710_s21 = smov %s1186_s22 }
 0x1b7   : > { %s1705_s25 = sld [smem:[#allocation17_spill]]  ;;  %s1712_s24 = smov %s1202_s26 }
 0x1b8   : > { %s1706_s13 = sld [smem:[#allocation18_spill]] }
 0x1b9   : > { %s1707_s27 = sld [smem:[#allocation19_spill]]  ;;  %s1709_s19 = smov %s1701_s10 }
 0x1ba   :  { %23 = sbr.rel (!%p21_p4) target bundleno = 15 (0xf), region = 120 }
 0x1bb   : > { %s1711_s22 = smov %s1703_s4 }
 0x1be   : > { %s1713_s26 = smov %s1706_s13 }
 0x1bf   :  { %731 = vsyncpa [#allocation4], 1 }
 0x1c0   :  { %733 = vsyncpa [#allocation4 + $0x1], 1 }
 0x1c1   :  { %734 = vsyncpa [#allocation7], 1 }
 0x1c2   :  { %736 = vsyncpa [#allocation7 + $0x1], 1 }
 0x1c3   :  { %737 = vsyncpa [#allocation5], 1 }
 0x1c4   :  { %739 = vsyncpa [#allocation5 + $0x1], 1 }

</bundles_post_ra>
